<compile_context>
chip_gen: v5e
topology: v5e:2x2
jax: 0.10.0
libtpu: 0.0.40
codegen_flags: <defaults>
</compile_context>

<pallas_src>
import jax
import jax.numpy as jnp
from jax.experimental import pallas as pl
from jax.experimental.pallas import tpu as pltpu

ROWS, COLS = 3, 6
FLAT = ROWS * COLS          # 18
LANE_BLOCK = 128            # demo block; scale to 512-2048 lanes for real N

# Whole-array block resident in VMEM (no tiling, no grid) for the tiny path.
_VMEM_SPEC = pl.BlockSpec(memory_space=pltpu.MemorySpace.VMEM)


# ---------------------------------------------------------------------------
# Single-instance path: exact CostModel.forward on a (3, 6) input.
# ---------------------------------------------------------------------------
def _cost_kernel(x_ref, s_ref, o_ref):
    # Single fused elementwise op on one vreg: out = x * |shipments|
    o_ref[...] = x_ref[...] * jnp.abs(s_ref[...])


@jax.jit
def cost_model_forward(x, shipments):
    """Returns (x * abs(shipments), shipments) — matches CostModel.forward."""
    out = pl.pallas_call(
        _cost_kernel,
        out_shape=jax.ShapeDtypeStruct(x.shape, x.dtype),
        in_specs=[_VMEM_SPEC, _VMEM_SPEC],
        out_specs=_VMEM_SPEC,
    )(x, shipments)
    # Parameter passthrough stays outside the kernel (no extra output DMA).
    return out, shipments


# ---------------------------------------------------------------------------
# Batched lane-dense path: N CostModel instances per call (perf pattern from
# review). x: (N, 3, 6), N a multiple of LANE_BLOCK.
# ---------------------------------------------------------------------------
def _cost_kernel_batched(x_ref, s_ref, o_ref):
    # x_ref/o_ref: (18, LANE_BLOCK) lane-dense block; s_ref: (18, 1) broadcasts
    # along the lane axis — abs + mul on full, unmasked vregs.
    o_ref[...] = x_ref[...] * jnp.abs(s_ref[...])


@jax.jit
def cost_model_forward_batched(x, shipments):
    """Batched forward: out[n] = x[n] * abs(shipments). x: (N, 3, 6)."""
    n = x.shape[0]
    # Layout plumbing in the wrapper (not the kernel): batch goes to the fast
    # lane axis so stores are full-width (last dim a multiple of 128).
    x_ld = jnp.transpose(x.reshape(n, FLAT), (1, 0))      # (18, N) lane-dense
    s_col = shipments.reshape(FLAT, 1)                     # (18, 1)
    out_ld = pl.pallas_call(
        _cost_kernel_batched,
        out_shape=jax.ShapeDtypeStruct((FLAT, n), x.dtype),
        grid=(n // LANE_BLOCK,),
        in_specs=[
            # 18 equals the full array dim, 128 satisfies the lane rule.
            pl.BlockSpec((FLAT, LANE_BLOCK), lambda i: (0, i)),
            pl.BlockSpec((FLAT, 1), lambda i: (0, 0)),
        ],
        out_specs=pl.BlockSpec((FLAT, LANE_BLOCK), lambda i: (0, i)),
        # Pure elementwise: output reuses the lane-dense temp's HBM buffer.
        input_output_aliases={0: 0},
        # "parallel" shards the batch grid across both TensorCores on v7x;
        # neutral (single TC) on v5e/v6e.
        compiler_params=pltpu.CompilerParams(
            dimension_semantics=("parallel",)),
    )(x_ld, s_col)
    out = jnp.transpose(out_ld, (1, 0)).reshape(n, ROWS, COLS)
    return out, shipments


def init_shipments(key):
    # torch.abs(torch.rand((3, 6))) * 10 — rand is already in [0, 1), so the
    # abs is a no-op at init; just scale. abs() is still applied in forward.
    return jax.random.uniform(key, (ROWS, COLS), dtype=jnp.float32) * 10.0


if __name__ == "__main__":
    key = jax.random.PRNGKey(0)
    k_ship, k_x, k_xb = jax.random.split(key, 3)

    shipments = init_shipments(k_ship)
    x = jax.random.normal(k_x, (ROWS, COLS), dtype=jnp.float32)

    # --- single-instance path (exact module semantics) ---
    out, ship_out = cost_model_forward(x, shipments)
    jax.block_until_ready(out)
    jax.block_until_ready(ship_out)

    ref = x * jnp.abs(shipments)
    assert jnp.allclose(out, ref, atol=1e-6), "mismatch vs reference"
    assert jnp.allclose(ship_out, shipments), "shipments passthrough mismatch"

    # --- batched lane-dense path (perf pattern) ---
    N = 2 * LANE_BLOCK  # small demo batch; grid = (2,)
    xb = jax.random.normal(k_xb, (N, ROWS, COLS), dtype=jnp.float32)
    outb, ship_out_b = cost_model_forward_batched(xb, shipments)
    jax.block_until_ready(outb)

    refb = xb * jnp.abs(shipments)[None]
    assert jnp.allclose(outb, refb, atol=1e-6), "batched mismatch vs reference"
    assert jnp.allclose(ship_out_b, shipments), "batched passthrough mismatch"

    print("KERNEL_OK")
</pallas_src>

<mosaic_0001>
module attributes {stable_mosaic.version = 11 : i64} {
  func.func @_cost_kernel(%arg0: memref<3x6xf32, #tpu.memory_space<vmem>>, %arg1: memref<3x6xf32, #tpu.memory_space<vmem>>, %arg2: memref<3x6xf32, #tpu.memory_space<vmem>>) attributes {dimension_semantics = [], scalar_prefetch = 0 : i64, scratch_operands = 0 : i64, tpu.core_type = #tpu.core_type<tc>} {
    %c0 = arith.constant 0 : index
    %c0_0 = arith.constant 0 : index
    %0 = vector.load %arg0[%c0, %c0_0] : memref<3x6xf32, #tpu.memory_space<vmem>>, vector<3x6xf32>
    %c0_1 = arith.constant 0 : index
    %c0_2 = arith.constant 0 : index
    %1 = vector.load %arg1[%c0_1, %c0_2] : memref<3x6xf32, #tpu.memory_space<vmem>>, vector<3x6xf32>
    %2 = math.absf %1 : vector<3x6xf32>
    %3 = arith.mulf %0, %2 : vector<3x6xf32>
    %c0_3 = arith.constant 0 : index
    %c0_4 = arith.constant 0 : index
    %4 = vector.load %arg2[%c0_3, %c0_4] : memref<3x6xf32, #tpu.memory_space<vmem>>, vector<3x6xf32>
    tpu.vector_store %arg2[%c0_3, %c0_4], %3 {strides = array<i32>} : memref<3x6xf32, #tpu.memory_space<vmem>>, vector<3x6xf32>,
    return
  }
}

</mosaic_0001>

<bundles_post_ra>
// kernel: cost_model_forward.1
= control target key start
LH: loop header
LB: loop body
LE: loop exit
PB: predicated region body
PF: predicated region fallthrough
CT: control target
= control target key end

     0   :  { %7 = vsyncpa [#allocation3], 0  ;;  %s172_s0 = inlined_call_operand.hbm [shape: f32[3,6], index: 0, kind: input, shape index: {}]   ;;  %s173_s1 = inlined_call_operand.hbm [shape: f32[3,6], index: 1, kind: input, shape index: {}]   ;;  %s174_s2 = inlined_call_operand.hbm [shape: f32[3,6], index: 2, kind: output, shape index: {}]  }
   0x1   :  { %8 = vsyncpa [#allocation6], 0 }
   0x2   :  { %9 = vsyncpa [#allocation4], 0  ;;  %s15_s11 = sshll.u32 %s172_s0, 4  ;;  %s145_s12 = smov [#allocation2]   ;;  %s16_s11 = int_to_ptr.hbm [resolvable:$true] %s15_s11 }
   0x3   :  { %s17_s13 = sshll.u32 %s145_s12, 4  ;;  %s26_s16 = sshll.u32 %s173_s1, 4  ;;  %s18_s13 = int_to_ptr.vmem [resolvable:$true] %s17_s13  ;;  %s27_s16 = int_to_ptr.hbm [resolvable:$true] %s26_s16 }
   0x4   :  { %20 = dma.hbm_to_vmem [thread:$0]  %s16_s11, 64, %s18_s13, [#allocation3]  }
   0x5   :  { %s146_s17 = smov [#allocation5]  }
   0x6   :  { %s28_s18 = sshll.u32 %s146_s17, 4  ;;  %s29_s18 = int_to_ptr.vmem [resolvable:$true] %s28_s18 }
   0x7   :  { %31 = dma.hbm_to_vmem [thread:$0]  %s27_s16, 64, %s29_s18, [#allocation6]  }
   0x8   :  { %139 = dma.done.wait [#allocation3], 64  }
   0x9   :  { %140 = vsyncadd [#allocation3], 4294967232 }
   0xa   :  { %141 = dma.done.wait [#allocation6], 64  }
   0xb   :  { %142 = vsyncadd [#allocation6], 4294967232  ;;  %v40_v0 = vld [vmem:[#allocation2] sm:$0x7]  ;;  %v41_v1 = vld [vmem:[#allocation5] sm:$0x7] }
   0xc   :  { %s147_s0 = smov [#allocation7]   ;;  %s53_s22 = sshll.u32 %s174_s2, 4  ;;  %v42_v2 = vand.u32 2147483647, %v41_v1  ;;  %vm44_vm0 = vcmask 43008   ;;  %s54_s22 = int_to_ptr.hbm [resolvable:$true] %s53_s22 }
   0xd   :  { %s51_s19 = sshll.u32 %s147_s0, 4  ;;  %s52_s19 = int_to_ptr.vmem [resolvable:$true] %s51_s19 }
   0xe   :  { %v43_v3 = vmul.f32 %v42_v2, %v40_v0 }
  0x10   :  { %45 = vst.msk [vmem:[#allocation7] sm:$0x7] %vm44_vm0, %v43_v3 }
  0x11   :  { %56 = dma.vmem_to_hbm [thread:$0]  %s52_s19, 64, %s54_s22, [#allocation4]  }
  0x12   :  { %143 = dma.done.wait [#allocation4], 64  }
  0x13   :  { %144 = vsyncadd [#allocation4], 4294967232 }
  0x14   :  { %61 = vsyncpa [#allocation3], 1 }
  0x15   :  { %62 = vsyncpa [#allocation6], 1 }
  0x16   :  { %63 = vsyncpa [#allocation4], 1 }

</bundles_post_ra>
